<compile_context>
chip_gen: v5e
topology: v5e:2x2
jax: 0.10.0
libtpu: 0.0.40
codegen_flags: <defaults>
</compile_context>

<pallas_src>
import functools

import jax
import jax.numpy as jnp
from jax.experimental import pallas as pl
from jax.experimental.pallas import tpu as pltpu


def _round_up(x, m):
    return ((x + m - 1) // m) * m


def _cdiv(a, b):
    return (a + b - 1) // b


_DEFAULT_VMEM_CAPACITY = 64 << 20  # worst case (v7x per-TC) if the query fails


def _vmem_capacity_bytes():
    try:
        info = pltpu.get_tpu_info()
        cap = getattr(info, "vmem_capacity_bytes", None)
        if cap:
            return int(cap)
    except Exception:
        pass
    return _DEFAULT_VMEM_CAPACITY


# ----------------------------------------------------------------------------
# Kernels
# ----------------------------------------------------------------------------

def _make_fused_kernel(num_layers, compute_dtype):
    """out = relu(... relu(x @ W1 + b1) ... @ Wn + bn), all layers fused."""

    def kernel(x_ref, *refs):
        # refs = (w1, b1, w2, b2, ..., wn, bn, out)
        out_ref = refs[2 * num_layers]
        h = x_ref[...].astype(compute_dtype)              # cast in-kernel (free VPU op)
        for l in range(num_layers):
            w = refs[2 * l][...]                           # (K_p, N_p) VMEM-resident
            b = refs[2 * l + 1][...]                       # (1, N_p) f32
            acc = jnp.dot(h, w, preferred_element_type=jnp.float32)   # MXU, f32 acc
            a = jnp.maximum(acc + b, 0.0)                  # bias + ReLU in f32
            h = a.astype(compute_dtype) if l + 1 < num_layers else a
        out_ref[...] = h.astype(out_ref.dtype)

    return kernel


def _make_linear_relu_kernel(compute_dtype):
    """Single Linear+ReLU layer, used by the layerwise (large-weight) fallback."""

    def kernel(x_ref, w_ref, b_ref, o_ref):
        h = x_ref[...].astype(compute_dtype)
        acc = jnp.dot(h, w_ref[...], preferred_element_type=jnp.float32)
        o_ref[...] = jnp.maximum(acc + b_ref[...], 0.0).astype(o_ref.dtype)

    return kernel


# ----------------------------------------------------------------------------
# Parameters
# ----------------------------------------------------------------------------

def init_mlp_params(key, input_dim, num_layers=2, hidden_layer_size=512):
    """PyTorch-layout params matching nn.Linear default U(-1/sqrt(fan_in), ...)."""
    params = []
    for i in range(num_layers):
        fan_in = hidden_layer_size if i > 0 else input_dim
        fan_out = hidden_layer_size
        key, kw, kb = jax.random.split(key, 3)
        bound = 1.0 / jnp.sqrt(float(fan_in))
        w = jax.random.uniform(kw, (fan_out, fan_in), jnp.float32, -bound, bound)
        b = jax.random.uniform(kb, (fan_out,), jnp.float32, -bound, bound)
        params.append((w, b))
    return params


def prepare_params(params, compute_dtype=jnp.bfloat16):
    """One-time: transpose (out,in)->(in,out), zero-pad dims to 128, cast weights.

    Zero-padding is exact: padded input cols hit zero weight rows, padded
    output cols get zero weights and zero bias, so relu(0) = 0 feeds zeros
    into the zero-padded rows of the next layer's weight.  Biases stay f32
    (added to the f32 accumulator); weights are cast once to compute_dtype.
    """
    prepared = []
    for (w, b) in params:
        dout, din = w.shape
        din_p = _round_up(din, 128)
        dout_p = _round_up(dout, 128)
        w_t = jnp.zeros((din_p, dout_p), jnp.float32).at[:din, :dout].set(w.T)
        w_t = w_t.astype(compute_dtype)
        b_p = jnp.zeros((1, dout_p), jnp.float32).at[0, :dout].set(b)
        prepared.append((w_t, b_p))
    return tuple(prepared)


# ----------------------------------------------------------------------------
# Planning (pure Python, shape/hardware based)
# ----------------------------------------------------------------------------

def _plan(B, prepared, compute_dtype, batch_tile):
    din_p = int(prepared[0][0].shape[0])
    dout_p = int(prepared[-1][0].shape[1])
    w_bytes = sum(int(w.size) * w.dtype.itemsize for (w, _) in prepared)
    b_bytes = sum(int(bb.size) * bb.dtype.itemsize for (_, bb) in prepared)
    max_h = max(int(w.shape[1]) for (w, _) in prepared)

    cap = _vmem_capacity_bytes()
    budget = int(cap * 0.65)                 # generation-aware VMEM budget

    is_lowp = jnp.dtype(compute_dtype).itemsize < 4
    row_align = 16 if is_lowp else 8         # bf16 packs 2 rows per sublane

    if batch_tile is None:
        # Bigger batch tiles on 128-MiB chips (v5e/v6e) when weights are modest;
        # keep the smaller cap on v7x (64 MiB + 2-TC grid split).
        batch_tile = 2048 if (cap >= (96 << 20) and w_bytes <= (8 << 20)) else 512
    batch_tile = max(int(batch_tile), row_align)

    tb = min(_round_up(B, row_align), batch_tile)
    # v7x shards the "parallel" batch axis across its 2 TensorCores: make sure
    # the grid has >= 2 tiles whenever the batch is big enough to split.
    if B > row_align and _round_up(B, tb) // tb < 2:
        tb = _round_up(_cdiv(B, 2), row_align)

    def fused_need(tb_):
        # double-buffered x/out tiles + intermediate activation headroom
        # + (single-buffered) resident weights/biases.
        act = 2 * tb_ * din_p * 4 + 2 * tb_ * dout_p * 4 + 2 * tb_ * max_h * 4
        return act + w_bytes + b_bytes

    while fused_need(tb) > budget and tb > row_align:
        tb = max(row_align, _round_up(tb // 2, row_align))

    fits_fused = fused_need(tb) <= budget
    return tb, budget, fits_fused


def _pick_n_tile(n_p, pref=512):
    t = min(pref, n_p)
    t = max(128, (t // 128) * 128)
    while n_p % t:
        t -= 128
    return max(t, 128)


# ----------------------------------------------------------------------------
# Forward implementations
# ----------------------------------------------------------------------------

@functools.partial(
    jax.jit,
    static_argnames=("out_dim", "tb", "compute_dtype", "single_buffer_weights",
                     "vmem_limit"))
def _mlp_forward_fused(x, prepared, *, out_dim, tb, compute_dtype,
                       single_buffer_weights, vmem_limit):
    B, din = x.shape
    num_layers = len(prepared)
    din_p = prepared[0][0].shape[0]
    dout_p = prepared[-1][0].shape[1]
    b_pad = _round_up(B, tb)

    # Skip the pad/copy glue op entirely when the input is already aligned.
    if din == din_p and B == b_pad:
        x_p = x
    else:
        x_p = jnp.zeros((b_pad, din_p), x.dtype).at[:B, :din].set(x)

    def const_spec(shape):
        # Grid-invariant block: stays resident in VMEM across all batch tiles.
        if single_buffer_weights:
            return pl.BlockSpec(shape, lambda i: (0, 0),
                                pipeline_mode=pl.Buffered(1))
        return pl.BlockSpec(shape, lambda i: (0, 0))

    in_specs = [pl.BlockSpec((tb, din_p), lambda i: (i, 0))]
    flat_params = []
    for (w_t, b2) in prepared:
        in_specs.append(const_spec(tuple(w_t.shape)))
        in_specs.append(const_spec(tuple(b2.shape)))
        flat_params += [w_t, b2]

    out_spec = pl.BlockSpec((tb, dout_p), lambda i: (i, 0))

    flops = 2 * b_pad * sum(int(w.shape[0]) * int(w.shape[1]) for (w, _) in prepared)
    bytes_accessed = int(
        x_p.size * x_p.dtype.itemsize
        + sum(int(w.size) * w.dtype.itemsize + int(bb.size) * bb.dtype.itemsize
              for (w, bb) in prepared)
        + b_pad * dout_p * 4)

    out = pl.pallas_call(
        _make_fused_kernel(num_layers, compute_dtype),
        out_shape=jax.ShapeDtypeStruct((b_pad, dout_p), jnp.float32),
        grid_spec=pltpu.PrefetchScalarGridSpec(
            num_scalar_prefetch=0,
            grid=(b_pad // tb,),
            in_specs=in_specs,
            out_specs=out_spec,
        ),
        compiler_params=pltpu.CompilerParams(
            dimension_semantics=("parallel",),        # batch tiles independent
            vmem_limit_bytes=int(vmem_limit),
        ),
        cost_estimate=pl.CostEstimate(
            flops=int(flops), transcendentals=0, bytes_accessed=bytes_accessed),
    )(x_p, *flat_params)

    return out[:B, :out_dim]


@functools.partial(
    jax.jit,
    static_argnames=("out_dim", "tb", "compute_dtype", "vmem_limit"))
def _mlp_forward_layerwise(x, prepared, *, out_dim, tb, compute_dtype, vmem_limit):
    """Fallback: one pallas_call per layer, weight tiled over its N dim."""
    B, din = x.shape
    din_p = prepared[0][0].shape[0]
    b_pad = _round_up(B, tb)

    if din == din_p and B == b_pad:
        h = x
    else:
        h = jnp.zeros((b_pad, din_p), x.dtype).at[:B, :din].set(x)

    for (w_t, b2) in prepared:
        k_p, n_p = int(w_t.shape[0]), int(w_t.shape[1])
        tn = _pick_n_tile(n_p)
        grid = (b_pad // tb, n_p // tn)
        h = pl.pallas_call(
            _make_linear_relu_kernel(compute_dtype),
            out_shape=jax.ShapeDtypeStruct((b_pad, n_p), jnp.float32),
            grid_spec=pltpu.PrefetchScalarGridSpec(
                num_scalar_prefetch=0,
                grid=grid,
                in_specs=[
                    pl.BlockSpec((tb, k_p), lambda i, j: (i, 0)),
                    pl.BlockSpec((k_p, tn), lambda i, j: (0, j)),
                    pl.BlockSpec((1, tn), lambda i, j: (0, j)),
                ],
                out_specs=pl.BlockSpec((tb, tn), lambda i, j: (i, j)),
            ),
            compiler_params=pltpu.CompilerParams(
                dimension_semantics=("parallel", "parallel"),
                vmem_limit_bytes=int(vmem_limit),
            ),
        )(h, w_t, b2)

    return h[:B, :out_dim]


# ----------------------------------------------------------------------------
# Public wrapper
# ----------------------------------------------------------------------------

_MODE_CACHE = {}


def mlp_forward(x, prepared, *, out_dim, batch_tile=None, force_layerwise=False):
    """x: (..., Din) f32; prepared: tuple of (w_t:(K_p,N_p), b:(1,N_p)) from prepare_params."""
    lead_shape = x.shape[:-1]
    if x.ndim != 2:
        x = x.reshape((-1, x.shape[-1]))
    B, din = x.shape

    compute_dtype = jnp.dtype(prepared[0][0].dtype)      # derived from the weights
    tb, vmem_limit, fits_fused = _plan(B, prepared, compute_dtype, batch_tile)

    if force_layerwise or not fits_fused:
        out = _mlp_forward_layerwise(x, prepared, out_dim=out_dim, tb=tb,
                                     compute_dtype=compute_dtype,
                                     vmem_limit=vmem_limit)
    else:
        key = (B, din, out_dim, tb, compute_dtype.name,
               tuple(tuple(int(d) for d in w.shape) for (w, _) in prepared))
        cached = _MODE_CACHE.get(key)
        modes = [cached] if cached else ["fused_single", "fused_double", "layerwise"]
        out = None
        last_err = None
        for mode in modes:
            try:
                if mode == "fused_single":
                    out = _mlp_forward_fused(x, prepared, out_dim=out_dim, tb=tb,
                                             compute_dtype=compute_dtype,
                                             single_buffer_weights=True,
                                             vmem_limit=vmem_limit)
                elif mode == "fused_double":
                    out = _mlp_forward_fused(x, prepared, out_dim=out_dim, tb=tb,
                                             compute_dtype=compute_dtype,
                                             single_buffer_weights=False,
                                             vmem_limit=vmem_limit)
                else:
                    out = _mlp_forward_layerwise(x, prepared, out_dim=out_dim, tb=tb,
                                                 compute_dtype=compute_dtype,
                                                 vmem_limit=vmem_limit)
                _MODE_CACHE[key] = mode
                break
            except Exception as e:          # e.g. Buffered(1) not supported
                last_err = e
                out = None
        if out is None:
            raise last_err

    if len(lead_shape) != 1:
        out = out.reshape(lead_shape + (out_dim,))
    return out


# ----------------------------------------------------------------------------
# Self-test
# ----------------------------------------------------------------------------

if __name__ == "__main__":
    key = jax.random.PRNGKey(0)

    batch = 4
    input_dim = 16
    num_layers = 2
    hidden = 32

    key, kx = jax.random.split(key)
    x = jax.random.normal(kx, (batch, input_dim), jnp.float32)

    params = init_mlp_params(key, input_dim, num_layers, hidden)

    # Pure-JAX reference of the original module (ReLU after every Linear).
    ref = x
    for (w, b) in params:
        ref = jnp.maximum(ref @ w.T + b, 0.0)

    # f32 path: parity with the fp32 PyTorch semantics.
    prep_f32 = prepare_params(params, compute_dtype=jnp.float32)
    y32 = jax.block_until_ready(mlp_forward(x, prep_f32, out_dim=hidden))
    assert y32.shape == (batch, hidden)
    assert jnp.allclose(y32, ref, atol=1e-5, rtol=1e-5)

    # bf16 path (default / fast): bf16 MXU matmuls with f32 accumulation.
    prep_bf16 = prepare_params(params, compute_dtype=jnp.bfloat16)
    y16 = jax.block_until_ready(mlp_forward(x, prep_bf16, out_dim=hidden))
    assert y16.shape == (batch, hidden)
    assert jnp.allclose(y16, ref, atol=3e-2, rtol=3e-2)

    # Layerwise fallback path (used when weights exceed the VMEM budget) —
    # exercised explicitly so it stays correct.
    yl = jax.block_until_ready(
        mlp_forward(x, prep_f32, out_dim=hidden, force_layerwise=True))
    assert jnp.allclose(yl, ref, atol=1e-5, rtol=1e-5)

    print("KERNEL_OK")
</pallas_src>

<mosaic_0001>
module attributes {stable_mosaic.version = 11 : i64} {
  func.func @kernel(%arg0: i32, %arg1: memref<8x128xf32, #tpu.memory_space<vmem>>, %arg2: memref<128x128xf32, #tpu.memory_space<vmem>>, %arg3: memref<1x128xf32, #tpu.memory_space<vmem>>, %arg4: memref<128x128xf32, #tpu.memory_space<vmem>>, %arg5: memref<1x128xf32, #tpu.memory_space<vmem>>, %arg6: memref<8x128xf32, #tpu.memory_space<vmem>>) attributes {dimension_semantics = [#tpu.dimension_semantics<parallel>], iteration_bounds = array<i64: 1>, scalar_prefetch = 0 : i64, scratch_operands = 0 : i64, tpu.core_type = #tpu.core_type<tc>, window_params = [{transform_indices = @transform_0, window_bounds = array<i64: 8, 128>}, {pipeline_mode = #tpu.pipeline_mode<synchronous>, transform_indices = @transform_1, window_bounds = array<i64: 128, 128>}, {pipeline_mode = #tpu.pipeline_mode<synchronous>, transform_indices = @transform_2, window_bounds = array<i64: 1, 128>}, {pipeline_mode = #tpu.pipeline_mode<synchronous>, transform_indices = @transform_3, window_bounds = array<i64: 128, 128>}, {pipeline_mode = #tpu.pipeline_mode<synchronous>, transform_indices = @transform_4, window_bounds = array<i64: 1, 128>}, {transform_indices = @transform_5, window_bounds = array<i64: 8, 128>}]} {
    %c0 = arith.constant 0 : index
    %c0_0 = arith.constant 0 : index
    %0 = vector.load %arg1[%c0, %c0_0] : memref<8x128xf32, #tpu.memory_space<vmem>>, vector<8x128xf32>
    %c0_1 = arith.constant 0 : index
    %c0_2 = arith.constant 0 : index
    %1 = vector.load %arg2[%c0_1, %c0_2] : memref<128x128xf32, #tpu.memory_space<vmem>>, vector<128x128xf32>
    %c0_3 = arith.constant 0 : index
    %c0_4 = arith.constant 0 : index
    %2 = vector.load %arg3[%c0_3, %c0_4] : memref<1x128xf32, #tpu.memory_space<vmem>>, vector<1x128xf32>
    %cst = arith.constant dense<0.000000e+00> : vector<8x128xf32>
    %3 = tpu.matmul %0, %1, %cst {dimension_numbers = #tpu.dot_dimension_numbers<[1], [0], [0], [1], [0, 0, 1, 1], [], []>} : vector<8x128xf32>, vector<128x128xf32>, vector<8x128xf32> -> vector<8x128xf32>
    %4 = vector.broadcast %2 : vector<1x128xf32> to vector<8x128xf32>
    %5 = arith.addf %3, %4 : vector<8x128xf32>
    %cst_5 = arith.constant 0.000000e+00 : f32
    %6 = vector.broadcast %cst_5 : f32 to vector<8x128xf32>
    %7 = arith.maximumf %5, %6 : vector<8x128xf32>
    %c0_6 = arith.constant 0 : index
    %c0_7 = arith.constant 0 : index
    %8 = vector.load %arg4[%c0_6, %c0_7] : memref<128x128xf32, #tpu.memory_space<vmem>>, vector<128x128xf32>
    %c0_8 = arith.constant 0 : index
    %c0_9 = arith.constant 0 : index
    %9 = vector.load %arg5[%c0_8, %c0_9] : memref<1x128xf32, #tpu.memory_space<vmem>>, vector<1x128xf32>
    %cst_10 = arith.constant dense<0.000000e+00> : vector<8x128xf32>
    %10 = tpu.matmul %7, %8, %cst_10 {dimension_numbers = #tpu.dot_dimension_numbers<[1], [0], [0], [1], [0, 0, 1, 1], [], []>} : vector<8x128xf32>, vector<128x128xf32>, vector<8x128xf32> -> vector<8x128xf32>
    %11 = vector.broadcast %9 : vector<1x128xf32> to vector<8x128xf32>
    %12 = arith.addf %10, %11 : vector<8x128xf32>
    %cst_11 = arith.constant 0.000000e+00 : f32
    %13 = vector.broadcast %cst_11 : f32 to vector<8x128xf32>
    %14 = arith.maximumf %12, %13 : vector<8x128xf32>
    %c0_12 = arith.constant 0 : index
    %c0_13 = arith.constant 0 : index
    %15 = vector.load %arg6[%c0_12, %c0_13] : memref<8x128xf32, #tpu.memory_space<vmem>>, vector<8x128xf32>
    tpu.vector_store %arg6[%c0_12, %c0_13], %14 {strides = array<i32>} : memref<8x128xf32, #tpu.memory_space<vmem>>, vector<8x128xf32>,
    return
  }
  func.func @transform_0(%arg0: i32) -> (i32, i32) {
    %c0_i32 = arith.constant 0 : i32
    %c0_i32_0 = arith.constant 0 : i32
    return %arg0, %c0_i32 : i32, i32
  }
  func.func @transform_1(%arg0: i32) -> (i32, i32) {
    %c0_i32 = arith.constant 0 : i32
    %c0_i32_0 = arith.constant 0 : i32
    %c0_i32_1 = arith.constant 0 : i32
    return %c0_i32, %c0_i32_0 : i32, i32
  }
  func.func @transform_2(%arg0: i32) -> (i32, i32) {
    %c0_i32 = arith.constant 0 : i32
    %c0_i32_0 = arith.constant 0 : i32
    %c0_i32_1 = arith.constant 0 : i32
    return %c0_i32, %c0_i32_0 : i32, i32
  }
  func.func @transform_3(%arg0: i32) -> (i32, i32) {
    %c0_i32 = arith.constant 0 : i32
    %c0_i32_0 = arith.constant 0 : i32
    %c0_i32_1 = arith.constant 0 : i32
    return %c0_i32, %c0_i32_0 : i32, i32
  }
  func.func @transform_4(%arg0: i32) -> (i32, i32) {
    %c0_i32 = arith.constant 0 : i32
    %c0_i32_0 = arith.constant 0 : i32
    %c0_i32_1 = arith.constant 0 : i32
    return %c0_i32, %c0_i32_0 : i32, i32
  }
  func.func @transform_5(%arg0: i32) -> (i32, i32) {
    %c0_i32 = arith.constant 0 : i32
    %c0_i32_0 = arith.constant 0 : i32
    return %arg0, %c0_i32 : i32, i32
  }
}

module attributes {stable_mosaic.version = 11 : i64} {
  func.func @kernel(%arg0: i32, %arg1: memref<8x128xf32, #tpu.memory_space<vmem>>, %arg2: memref<128x128xf32, #tpu.memory_space<vmem>>, %arg3: memref<1x128xf32, #tpu.memory_space<vmem>>, %arg4: memref<128x128xf32, #tpu.memory_space<vmem>>, %arg5: memref<1x128xf32, #tpu.memory_space<vmem>>, %arg6: memref<8x128xf32, #tpu.memory_space<vmem>>) attributes {dimension_semantics = [#tpu.dimension_semantics<parallel>], iteration_bounds = array<i64: 1>, scalar_prefetch = 0 : i64, scratch_operands = 0 : i64, tpu.core_type = #tpu.core_type<tc>, window_params = [{transform_indices = @transform_0, window_bounds = array<i64: 8, 128>}, {pipeline_mode = #tpu.pipeline_mode<synchronous>, transform_indices = @transform_1, window_bounds = array<i64: 128, 128>}, {pipeline_mode = #tpu.pipeline_mode<synchronous>, transform_indices = @transform_2, window_bounds = array<i64: 1, 128>}, {pipeline_mode = #tpu.pipeline_mode<synchronous>, transform_indices = @transform_3, window_bounds = array<i64: 128, 128>}, {pipeline_mode = #tpu.pipeline_mode<synchronous>, transform_indices = @transform_4, window_bounds = array<i64: 1, 128>}, {transform_indices = @transform_5, window_bounds = array<i64: 8, 128>}]} {
    %c0 = arith.constant 0 : index
    %c0_0 = arith.constant 0 : index
    %0 = vector.load %arg1[%c0, %c0_0] : memref<8x128xf32, #tpu.memory_space<vmem>>, vector<8x128xf32>
    %c0_1 = arith.constant 0 : index
    %c0_2 = arith.constant 0 : index
    %1 = vector.load %arg2[%c0_1, %c0_2] : memref<128x128xf32, #tpu.memory_space<vmem>>, vector<128x128xf32>
    %c0_3 = arith.constant 0 : index
    %c0_4 = arith.constant 0 : index
    %2 = vector.load %arg3[%c0_3, %c0_4] : memref<1x128xf32, #tpu.memory_space<vmem>>, vector<1x128xf32>
    %cst = arith.constant dense<0.000000e+00> : vector<8x128xf32>
    %3 = tpu.matmul %0, %1, %cst {dimension_numbers = #tpu.dot_dimension_numbers<[1], [0], [0], [1], [0, 0, 1, 1], [], []>} : vector<8x128xf32>, vector<128x128xf32>, vector<8x128xf32> -> vector<8x128xf32>
    %4 = vector.broadcast %2 : vector<1x128xf32> to vector<8x128xf32>
    %5 = arith.addf %3, %4 : vector<8x128xf32>
    %cst_5 = arith.constant 0.000000e+00 : f32
    %6 = vector.broadcast %cst_5 : f32 to vector<8x128xf32>
    %7 = arith.maximumf %5, %6 : vector<8x128xf32>
    %c0_6 = arith.constant 0 : index
    %c0_7 = arith.constant 0 : index
    %8 = vector.load %arg4[%c0_6, %c0_7] : memref<128x128xf32, #tpu.memory_space<vmem>>, vector<128x128xf32>
    %c0_8 = arith.constant 0 : index
    %c0_9 = arith.constant 0 : index
    %9 = vector.load %arg5[%c0_8, %c0_9] : memref<1x128xf32, #tpu.memory_space<vmem>>, vector<1x128xf32>
    %cst_10 = arith.constant dense<0.000000e+00> : vector<8x128xf32>
    %10 = tpu.matmul %7, %8, %cst_10 {dimension_numbers = #tpu.dot_dimension_numbers<[1], [0], [0], [1], [0, 0, 1, 1], [], []>} : vector<8x128xf32>, vector<128x128xf32>, vector<8x128xf32> -> vector<8x128xf32>
    %11 = vector.broadcast %9 : vector<1x128xf32> to vector<8x128xf32>
    %12 = arith.addf %10, %11 : vector<8x128xf32>
    %cst_11 = arith.constant 0.000000e+00 : f32
    %13 = vector.broadcast %cst_11 : f32 to vector<8x128xf32>
    %14 = arith.maximumf %12, %13 : vector<8x128xf32>
    %c0_12 = arith.constant 0 : index
    %c0_13 = arith.constant 0 : index
    %15 = vector.load %arg6[%c0_12, %c0_13] : memref<8x128xf32, #tpu.memory_space<vmem>>, vector<8x128xf32>
    tpu.vector_store %arg6[%c0_12, %c0_13], %14 {strides = array<i32>} : memref<8x128xf32, #tpu.memory_space<vmem>>, vector<8x128xf32>,
    return
  }
  func.func @transform_0(%arg0: i32) -> (i32, i32) {
    %c0_i32 = arith.constant 0 : i32
    %c0_i32_0 = arith.constant 0 : i32
    return %arg0, %c0_i32 : i32, i32
  }
  func.func @transform_1(%arg0: i32) -> (i32, i32) {
    %c0_i32 = arith.constant 0 : i32
    %c0_i32_0 = arith.constant 0 : i32
    %c0_i32_1 = arith.constant 0 : i32
    return %c0_i32, %c0_i32_0 : i32, i32
  }
  func.func @transform_2(%arg0: i32) -> (i32, i32) {
    %c0_i32 = arith.constant 0 : i32
    %c0_i32_0 = arith.constant 0 : i32
    %c0_i32_1 = arith.constant 0 : i32
    return %c0_i32, %c0_i32_0 : i32, i32
  }
  func.func @transform_3(%arg0: i32) -> (i32, i32) {
    %c0_i32 = arith.constant 0 : i32
    %c0_i32_0 = arith.constant 0 : i32
    %c0_i32_1 = arith.constant 0 : i32
    return %c0_i32, %c0_i32_0 : i32, i32
  }
  func.func @transform_4(%arg0: i32) -> (i32, i32) {
    %c0_i32 = arith.constant 0 : i32
    %c0_i32_0 = arith.constant 0 : i32
    %c0_i32_1 = arith.constant 0 : i32
    return %c0_i32, %c0_i32_0 : i32, i32
  }
  func.func @transform_5(%arg0: i32) -> (i32, i32) {
    %c0_i32 = arith.constant 0 : i32
    %c0_i32_0 = arith.constant 0 : i32
    return %arg0, %c0_i32 : i32, i32
  }
}

module attributes {stable_mosaic.version = 11 : i64} {
  func.func @kernel(%arg0: i32, %arg1: i32, %arg2: memref<8x128xf32, #tpu.memory_space<vmem>>, %arg3: memref<128x128xf32, #tpu.memory_space<vmem>>, %arg4: memref<1x128xf32, #tpu.memory_space<vmem>>, %arg5: memref<8x128xf32, #tpu.memory_space<vmem>>) attributes {dimension_semantics = [#tpu.dimension_semantics<parallel>, #tpu.dimension_semantics<parallel>], iteration_bounds = array<i64: 1, 1>, scalar_prefetch = 0 : i64, scratch_operands = 0 : i64, tpu.core_type = #tpu.core_type<tc>, window_params = [{transform_indices = @transform_0, window_bounds = array<i64: 8, 128>}, {transform_indices = @transform_1, window_bounds = array<i64: 128, 128>}, {transform_indices = @transform_2, window_bounds = array<i64: 1, 128>}, {transform_indices = @transform_3, window_bounds = array<i64: 8, 128>}]} {
    %c0 = arith.constant 0 : index
    %c0_0 = arith.constant 0 : index
    %0 = vector.load %arg2[%c0, %c0_0] : memref<8x128xf32, #tpu.memory_space<vmem>>, vector<8x128xf32>
    %c0_1 = arith.constant 0 : index
    %c0_2 = arith.constant 0 : index
    %1 = vector.load %arg3[%c0_1, %c0_2] : memref<128x128xf32, #tpu.memory_space<vmem>>, vector<128x128xf32>
    %cst = arith.constant dense<0.000000e+00> : vector<8x128xf32>
    %2 = tpu.matmul %0, %1, %cst {dimension_numbers = #tpu.dot_dimension_numbers<[1], [0], [0], [1], [0, 0, 1, 1], [], []>} : vector<8x128xf32>, vector<128x128xf32>, vector<8x128xf32> -> vector<8x128xf32>
    %c0_3 = arith.constant 0 : index
    %c0_4 = arith.constant 0 : index
    %3 = vector.load %arg4[%c0_3, %c0_4] : memref<1x128xf32, #tpu.memory_space<vmem>>, vector<1x128xf32>
    %4 = vector.broadcast %3 : vector<1x128xf32> to vector<8x128xf32>
    %5 = arith.addf %2, %4 : vector<8x128xf32>
    %cst_5 = arith.constant 0.000000e+00 : f32
    %6 = vector.broadcast %cst_5 : f32 to vector<8x128xf32>
    %7 = arith.maximumf %5, %6 : vector<8x128xf32>
    %c0_6 = arith.constant 0 : index
    %c0_7 = arith.constant 0 : index
    %8 = vector.load %arg5[%c0_6, %c0_7] : memref<8x128xf32, #tpu.memory_space<vmem>>, vector<8x128xf32>
    tpu.vector_store %arg5[%c0_6, %c0_7], %7 {strides = array<i32>} : memref<8x128xf32, #tpu.memory_space<vmem>>, vector<8x128xf32>,
    return
  }
  func.func @transform_0(%arg0: i32, %arg1: i32) -> (i32, i32) {
    %c0_i32 = arith.constant 0 : i32
    %c0_i32_0 = arith.constant 0 : i32
    return %arg0, %c0_i32 : i32, i32
  }
  func.func @transform_1(%arg0: i32, %arg1: i32) -> (i32, i32) {
    %c0_i32 = arith.constant 0 : i32
    %c0_i32_0 = arith.constant 0 : i32
    return %c0_i32, %arg1 : i32, i32
  }
  func.func @transform_2(%arg0: i32, %arg1: i32) -> (i32, i32) {
    %c0_i32 = arith.constant 0 : i32
    %c0_i32_0 = arith.constant 0 : i32
    return %c0_i32, %arg1 : i32, i32
  }
  func.func @transform_3(%arg0: i32, %arg1: i32) -> (i32, i32) {
    %c0_i32 = arith.constant 0 : i32
    return %arg0, %arg1 : i32, i32
  }
}

</mosaic_0001>

<bundles_post_ra>
// kernel: _mlp_forward_fused.1
= control target key start
LH: loop header
LB: loop body
LE: loop exit
PB: predicated region body
PF: predicated region fallthrough
CT: control target
= control target key end

     0   :  { %10 = vsyncpa [#allocation3], 0  ;;  %s252_s0 = inlined_call_operand.vmem [shape: f32[8,128], index: 0, kind: input, shape index: {}]   ;;  %s253_s1 = inlined_call_operand.hbm [shape: f32[128,128], index: 1, kind: input, shape index: {}]   ;;  %s254_s2 = inlined_call_operand.vmem [shape: f32[1,128], index: 2, kind: input, shape index: {}]   ;;  %s255_s3 = inlined_call_operand.hbm [shape: f32[128,128], index: 3, kind: input, shape index: {}]   ;;  %s256_s4 = inlined_call_operand.vmem [shape: f32[1,128], index: 4, kind: input, shape index: {}]   ;;  %s257_s5 = inlined_call_operand.vmem [shape: f32[8,128], index: 5, kind: output, shape index: {}]  }
   0x1   :  { %s18_s20 = sshll.u32 %s253_s1, 4  ;;  %s19_s20 = int_to_ptr.hbm [resolvable:$true] %s18_s20 }
   0x2   :  { %11 = vsyncpa [#allocation5], 0  ;;  %s200_s21 = smov [#allocation2]   ;;  %s33_s25 = sshll.u32 %s255_s3, 4  ;;  %s34_s25 = int_to_ptr.hbm [resolvable:$true] %s33_s25 }
   0x3   :  { %s20_s22 = sshll.u32 %s200_s21, 4  ;;  %s201_s26 = smov 128   ;;  %s21_s22 = int_to_ptr.vmem [resolvable:$true] %s20_s22 }
   0x4   :  { %s202_s27 = smov 8   ;;  %s203_s28 = smov [#allocation4]  }
   0x5   :  { %26 = dma.hbm_to_vmem [thread:$0]  %s19_s20, 2048, %s21_s22, [#allocation3], %s201_s26, %s201_s26, %s202_s27  }
   0x6   :  { %s35_s29 = sshll.u32 %s203_s28, 4  ;;  %s36_s29 = int_to_ptr.vmem [resolvable:$true] %s35_s29 }
   0x7   :  { %41 = dma.hbm_to_vmem [thread:$0]  %s34_s25, 2048, %s36_s29, [#allocation5], %s201_s26, %s201_s26, %s202_s27  }
   0x8   :  { %196 = dma.done.wait [#allocation3], 2048  }
   0x9   :  { %197 = vsyncadd [#allocation3], 4294965248 }
   0xa   :  { %198 = dma.done.wait [#allocation5], 2048  }
   0xb   :  { %199 = vsyncadd [#allocation5], 4294965248  ;;  %v68_v0 = vld [vmem:[#allocation2 + $0x78] sm:$0xff]  ;;  %v67_v1 = vld [vmem:[#allocation2 + $0x70] sm:$0xff] }
   0xc   :  { %73 = vmatpush.msra.mxu0 %v68_v0  ;;  %v66_v2 = vld [vmem:[#allocation2 + $0x68] sm:$0xff]  ;;  %v65_v3 = vld [vmem:[#allocation2 + $0x60] sm:$0xff]  ;;  %v109_v4 = vld [vmem:[#allocation4 + $0x78] sm:$0xff] }
   0xd   :  { %v64_v5 = vld [vmem:[#allocation2 + $0x58] sm:$0xff]  ;;  %114 = vmatpush.msra.mxu1 %v109_v4  ;;  %v108_v6 = vld [vmem:[#allocation4 + $0x70] sm:$0xff]  ;;  %v107_v7 = vld [vmem:[#allocation4 + $0x68] sm:$0xff] }
   0xe   :  { %74 = vmatpush.msra.mxu0 %v67_v1  ;;  %v63_v8 = vld [vmem:[#allocation2 + $0x50] sm:$0xff]  ;;  %v106_v9 = vld [vmem:[#allocation4 + $0x60] sm:$0xff]  ;;  %v62_v10 = vld [vmem:[#allocation2 + $0x48] sm:$0xff] }
   0xf   :  { %115 = vmatpush.msra.mxu1 %v108_v6  ;;  %v105_v11 = vld [vmem:[#allocation4 + $0x58] sm:$0xff]  ;;  %v61_v12 = vld [vmem:[#allocation2 + $0x40] sm:$0xff]  ;;  %v104_v13 = vld [vmem:[#allocation4 + $0x50] sm:$0xff] }
  0x10   :  { %75 = vmatpush.msra.mxu0 %v66_v2  ;;  %v60_v14 = vld [vmem:[#allocation2 + $0x38] sm:$0xff]  ;;  %v103_v15 = vld [vmem:[#allocation4 + $0x48] sm:$0xff]  ;;  %v59_v16 = vld [vmem:[#allocation2 + $0x30] sm:$0xff] }
  0x11   :  { %116 = vmatpush.msra.mxu1 %v107_v7  ;;  %v102_v17 = vld [vmem:[#allocation4 + $0x40] sm:$0xff]  ;;  %v58_v18 = vld [vmem:[#allocation2 + $0x28] sm:$0xff]  ;;  %v101_v19 = vld [vmem:[#allocation4 + $0x38] sm:$0xff] }
  0x12   :  { %76 = vmatpush.msra.mxu0 %v65_v3  ;;  %v57_v20 = vld [vmem:[#allocation2 + $0x20] sm:$0xff]  ;;  %v100_v21 = vld [vmem:[#allocation4 + $0x30] sm:$0xff]  ;;  %v56_v22 = vld [vmem:[#allocation2 + $0x18] sm:$0xff] }
  0x13   :  { %117 = vmatpush.msra.mxu1 %v106_v9  ;;  %v99_v23 = vld [vmem:[#allocation4 + $0x28] sm:$0xff]  ;;  %v55_v24 = vld [vmem:[#allocation2 + $0x10] sm:$0xff]  ;;  %v98_v25 = vld [vmem:[#allocation4 + $0x20] sm:$0xff] }
  0x14   :  { %77 = vmatpush.msra.mxu0 %v64_v5  ;;  %v54_v26 = vld [vmem:[#allocation2 + $0x8] sm:$0xff]  ;;  %v97_v27 = vld [vmem:[#allocation4 + $0x18] sm:$0xff]  ;;  %v53_v28 = vld [vmem:[#allocation2] sm:$0xff] }
  0x15   :  { %118 = vmatpush.msra.mxu1 %v105_v11  ;;  %v52_v29 = vld [vmem:[%s252_s0] sm:$0xff]  ;;  %v96_v30 = vld [vmem:[#allocation4 + $0x10] sm:$0xff]  ;;  %v95_v31 = vld [vmem:[#allocation4 + $0x8] sm:$0xff] }
  0x16   :  { %78 = vmatpush.msra.mxu0 %v63_v8  ;;  %v94_v32 = vld [vmem:[#allocation4] sm:$0xff] }
  0x17   :  { %119 = vmatpush.msra.mxu1 %v104_v13  ;;  %v146_v33 = vld [vmem:[%s254_s2] ss:$0 sm:$0xff] }
  0x18   :  { %79 = vmatpush.msra.mxu0 %v62_v10  ;;  %v147_v37 = vld [vmem:[%s256_s4] ss:$0 sm:$0xff] }
  0x19   :  { %120 = vmatpush.msra.mxu1 %v103_v15 }
  0x1a   :  { %80 = vmatpush.msra.mxu0 %v61_v12 }
  0x1b   :  { %121 = vmatpush.msra.mxu1 %v102_v17 }
  0x1c   :  { %81 = vmatpush.msra.mxu0 %v60_v14 }
  0x1d   :  { %122 = vmatpush.msra.mxu1 %v101_v19 }
  0x1e   :  { %82 = vmatpush.msra.mxu0 %v59_v16 }
  0x1f   :  { %123 = vmatpush.msra.mxu1 %v100_v21 }
  0x20   :  { %83 = vmatpush.msra.mxu0 %v58_v18 }
  0x21   :  { %124 = vmatpush.msra.mxu1 %v99_v23 }
  0x22   :  { %84 = vmatpush.msra.mxu0 %v57_v20 }
  0x23   :  { %125 = vmatpush.msra.mxu1 %v98_v25 }
  0x24   :  { %85 = vmatpush.msra.mxu0 %v56_v22 }
  0x25   :  { %126 = vmatpush.msra.mxu1 %v97_v27 }
  0x26   :  { %86 = vmatpush.msra.mxu0 %v55_v24 }
  0x27   :  { %127 = vmatpush.msra.mxu1 %v96_v30 }
  0x28   :  { %87 = vmatpush.msra.mxu0 %v54_v26 }
  0x29   :  { %128 = vmatpush.msra.mxu1 %v95_v31 }
  0x2a   :  { %88 = vmatpush.msra.mxu0 %v53_v28 }
  0x2b   :  { %89 = vmatmul.f32.vlgmr.msra.gmra.mxu0 %v52_v29  ;;  %129 = vmatpush.msra.mxu1 %v94_v32 }
  0xa8   :  { %v90_v34 = vpop.f32.mrf.mxu0 }
  0xa9   :  { %v91_v35 = vadd.f32 %v146_v33, %v90_v34 }
  0xab   :  { %v93_v36 = vmax.f32 %v91_v35, 0.0 }
  0xad   :  { %130 = vmatmul.f32.vlgmr.msra.gmra.mxu1 %v93_v36 }
 0x12a   :  { %v131_v38 = vpop.f32.mrf.mxu1 }
 0x12b   :  { %v132_v39 = vadd.f32 %v147_v37, %v131_v38 }
 0x12d   :  { %v134_v40 = vmax.f32 %v132_v39, 0.0 }
 0x12f   :  { %135 = vst [vmem:[%s257_s5] sm:$0xff] %v134_v40 }
 0x130   :  { %140 = vsyncpa [#allocation3], 1 }
 0x131   :  { %141 = vsyncpa [#allocation5], 1 }

// kernel: _mlp_forward_fused.1
= control target key start
LH: loop header
LB: loop body
LE: loop exit
PB: predicated region body
PF: predicated region fallthrough
CT: control target
= control target key end

     0   :  { %10 = vsyncpa [#allocation3], 0  ;;  %s252_s0 = inlined_call_operand.vmem [shape: f32[8,128], index: 0, kind: input, shape index: {}]   ;;  %s253_s1 = inlined_call_operand.hbm [shape: f32[128,128], index: 1, kind: input, shape index: {}]   ;;  %s254_s2 = inlined_call_operand.vmem [shape: f32[1,128], index: 2, kind: input, shape index: {}]   ;;  %s255_s3 = inlined_call_operand.hbm [shape: f32[128,128], index: 3, kind: input, shape index: {}]   ;;  %s256_s4 = inlined_call_operand.vmem [shape: f32[1,128], index: 4, kind: input, shape index: {}]   ;;  %s257_s5 = inlined_call_operand.vmem [shape: f32[8,128], index: 5, kind: output, shape index: {}]  }
   0x1   :  { %s18_s20 = sshll.u32 %s253_s1, 4  ;;  %s19_s20 = int_to_ptr.hbm [resolvable:$true] %s18_s20 }
   0x2   :  { %11 = vsyncpa [#allocation5], 0  ;;  %s200_s21 = smov [#allocation2]   ;;  %s33_s25 = sshll.u32 %s255_s3, 4  ;;  %s34_s25 = int_to_ptr.hbm [resolvable:$true] %s33_s25 }
   0x3   :  { %s20_s22 = sshll.u32 %s200_s21, 4  ;;  %s201_s26 = smov 128   ;;  %s21_s22 = int_to_ptr.vmem [resolvable:$true] %s20_s22 }
   0x4   :  { %s202_s27 = smov 8   ;;  %s203_s28 = smov [#allocation4]  }
   0x5   :  { %26 = dma.hbm_to_vmem [thread:$0]  %s19_s20, 2048, %s21_s22, [#allocation3], %s201_s26, %s201_s26, %s202_s27  }
   0x6   :  { %s35_s29 = sshll.u32 %s203_s28, 4  ;;  %s36_s29 = int_to_ptr.vmem [resolvable:$true] %s35_s29 }
   0x7   :  { %41 = dma.hbm_to_vmem [thread:$0]  %s34_s25, 2048, %s36_s29, [#allocation5], %s201_s26, %s201_s26, %s202_s27  }
   0x8   :  { %196 = dma.done.wait [#allocation3], 2048  }
   0x9   :  { %197 = vsyncadd [#allocation3], 4294965248 }
   0xa   :  { %198 = dma.done.wait [#allocation5], 2048  }
   0xb   :  { %199 = vsyncadd [#allocation5], 4294965248  ;;  %v68_v0 = vld [vmem:[#allocation2 + $0x78] sm:$0xff]  ;;  %v67_v1 = vld [vmem:[#allocation2 + $0x70] sm:$0xff] }
   0xc   :  { %73 = vmatpush.msra.mxu0 %v68_v0  ;;  %v66_v2 = vld [vmem:[#allocation2 + $0x68] sm:$0xff]  ;;  %v65_v3 = vld [vmem:[#allocation2 + $0x60] sm:$0xff]  ;;  %v109_v4 = vld [vmem:[#allocation4 + $0x78] sm:$0xff] }
   0xd   :  { %v64_v5 = vld [vmem:[#allocation2 + $0x58] sm:$0xff]  ;;  %114 = vmatpush.msra.mxu1 %v109_v4  ;;  %v108_v6 = vld [vmem:[#allocation4 + $0x70] sm:$0xff]  ;;  %v107_v7 = vld [vmem:[#allocation4 + $0x68] sm:$0xff] }
   0xe   :  { %74 = vmatpush.msra.mxu0 %v67_v1  ;;  %v63_v8 = vld [vmem:[#allocation2 + $0x50] sm:$0xff]  ;;  %v106_v9 = vld [vmem:[#allocation4 + $0x60] sm:$0xff]  ;;  %v62_v10 = vld [vmem:[#allocation2 + $0x48] sm:$0xff] }
   0xf   :  { %115 = vmatpush.msra.mxu1 %v108_v6  ;;  %v105_v11 = vld [vmem:[#allocation4 + $0x58] sm:$0xff]  ;;  %v61_v12 = vld [vmem:[#allocation2 + $0x40] sm:$0xff]  ;;  %v104_v13 = vld [vmem:[#allocation4 + $0x50] sm:$0xff] }
  0x10   :  { %75 = vmatpush.msra.mxu0 %v66_v2  ;;  %v60_v14 = vld [vmem:[#allocation2 + $0x38] sm:$0xff]  ;;  %v103_v15 = vld [vmem:[#allocation4 + $0x48] sm:$0xff]  ;;  %v59_v16 = vld [vmem:[#allocation2 + $0x30] sm:$0xff] }
  0x11   :  { %116 = vmatpush.msra.mxu1 %v107_v7  ;;  %v102_v17 = vld [vmem:[#allocation4 + $0x40] sm:$0xff]  ;;  %v58_v18 = vld [vmem:[#allocation2 + $0x28] sm:$0xff]  ;;  %v101_v19 = vld [vmem:[#allocation4 + $0x38] sm:$0xff] }
  0x12   :  { %76 = vmatpush.msra.mxu0 %v65_v3  ;;  %v57_v20 = vld [vmem:[#allocation2 + $0x20] sm:$0xff]  ;;  %v100_v21 = vld [vmem:[#allocation4 + $0x30] sm:$0xff]  ;;  %v56_v22 = vld [vmem:[#allocation2 + $0x18] sm:$0xff] }
  0x13   :  { %117 = vmatpush.msra.mxu1 %v106_v9  ;;  %v99_v23 = vld [vmem:[#allocation4 + $0x28] sm:$0xff]  ;;  %v55_v24 = vld [vmem:[#allocation2 + $0x10] sm:$0xff]  ;;  %v98_v25 = vld [vmem:[#allocation4 + $0x20] sm:$0xff] }
  0x14   :  { %77 = vmatpush.msra.mxu0 %v64_v5  ;;  %v54_v26 = vld [vmem:[#allocation2 + $0x8] sm:$0xff]  ;;  %v97_v27 = vld [vmem:[#allocation4 + $0x18] sm:$0xff]  ;;  %v53_v28 = vld [vmem:[#allocation2] sm:$0xff] }
  0x15   :  { %118 = vmatpush.msra.mxu1 %v105_v11  ;;  %v52_v29 = vld [vmem:[%s252_s0] sm:$0xff]  ;;  %v96_v30 = vld [vmem:[#allocation4 + $0x10] sm:$0xff]  ;;  %v95_v31 = vld [vmem:[#allocation4 + $0x8] sm:$0xff] }
  0x16   :  { %78 = vmatpush.msra.mxu0 %v63_v8  ;;  %v94_v32 = vld [vmem:[#allocation4] sm:$0xff] }
  0x17   :  { %119 = vmatpush.msra.mxu1 %v104_v13  ;;  %v146_v33 = vld [vmem:[%s254_s2] ss:$0 sm:$0xff] }
  0x18   :  { %79 = vmatpush.msra.mxu0 %v62_v10  ;;  %v147_v37 = vld [vmem:[%s256_s4] ss:$0 sm:$0xff] }
  0x19   :  { %120 = vmatpush.msra.mxu1 %v103_v15 }
  0x1a   :  { %80 = vmatpush.msra.mxu0 %v61_v12 }
  0x1b   :  { %121 = vmatpush.msra.mxu1 %v102_v17 }
  0x1c   :  { %81 = vmatpush.msra.mxu0 %v60_v14 }
  0x1d   :  { %122 = vmatpush.msra.mxu1 %v101_v19 }
  0x1e   :  { %82 = vmatpush.msra.mxu0 %v59_v16 }
  0x1f   :  { %123 = vmatpush.msra.mxu1 %v100_v21 }
  0x20   :  { %83 = vmatpush.msra.mxu0 %v58_v18 }
  0x21   :  { %124 = vmatpush.msra.mxu1 %v99_v23 }
  0x22   :  { %84 = vmatpush.msra.mxu0 %v57_v20 }
  0x23   :  { %125 = vmatpush.msra.mxu1 %v98_v25 }
  0x24   :  { %85 = vmatpush.msra.mxu0 %v56_v22 }
  0x25   :  { %126 = vmatpush.msra.mxu1 %v97_v27 }
  0x26   :  { %86 = vmatpush.msra.mxu0 %v55_v24 }
  0x27   :  { %127 = vmatpush.msra.mxu1 %v96_v30 }
  0x28   :  { %87 = vmatpush.msra.mxu0 %v54_v26 }
  0x29   :  { %128 = vmatpush.msra.mxu1 %v95_v31 }
  0x2a   :  { %88 = vmatpush.msra.mxu0 %v53_v28 }
  0x2b   :  { %89 = vmatmul.f32.vlgmr.msra.gmra.mxu0 %v52_v29  ;;  %129 = vmatpush.msra.mxu1 %v94_v32 }
  0xa8   :  { %v90_v34 = vpop.f32.mrf.mxu0 }
  0xa9   :  { %v91_v35 = vadd.f32 %v146_v33, %v90_v34 }
  0xab   :  { %v93_v36 = vmax.f32 %v91_v35, 0.0 }
  0xad   :  { %130 = vmatmul.f32.vlgmr.msra.gmra.mxu1 %v93_v36 }
 0x12a   :  { %v131_v38 = vpop.f32.mrf.mxu1 }
 0x12b   :  { %v132_v39 = vadd.f32 %v147_v37, %v131_v38 }
 0x12d   :  { %v134_v40 = vmax.f32 %v132_v39, 0.0 }
 0x12f   :  { %135 = vst [vmem:[%s257_s5] sm:$0xff] %v134_v40 }
 0x130   :  { %140 = vsyncpa [#allocation3], 1 }
 0x131   :  { %141 = vsyncpa [#allocation5], 1 }

// kernel: _mlp_forward_layerwise.2
= control target key start
LH: loop header
LB: loop body
LE: loop exit
PB: predicated region body
PF: predicated region fallthrough
CT: control target
= control target key end

     0   :  { %8 = vsyncpa [#allocation3], 0  ;;  %s108_s15 = smov [#allocation2]   ;;  %s109_s17 = smov 128   ;;  %s143_s0 = inlined_call_operand.vmem [shape: f32[8,128], index: 0, kind: input, shape index: {}]   ;;  %s144_s1 = inlined_call_operand.hbm [shape: f32[128,128], index: 1, kind: input, shape index: {}]   ;;  %s145_s2 = inlined_call_operand.vmem [shape: f32[1,128], index: 2, kind: input, shape index: {}]   ;;  %s146_s3 = inlined_call_operand.vmem [shape: f32[8,128], index: 3, kind: output, shape index: {}]  }
   0x1   :  { %s15_s14 = sshll.u32 %s144_s1, 4  ;;  %s17_s16 = sshll.u32 %s108_s15, 4  ;;  %s16_s14 = int_to_ptr.hbm [resolvable:$true] %s15_s14  ;;  %s18_s16 = int_to_ptr.vmem [resolvable:$true] %s17_s16 }
   0x2   :  { %s110_s18 = smov 8  }
   0x3   :  { %23 = dma.hbm_to_vmem [thread:$0]  %s16_s14, 2048, %s18_s16, [#allocation3], %s109_s17, %s109_s17, %s110_s18  }
   0x4   :  { %106 = dma.done.wait [#allocation3], 2048  }
   0x5   :  { %107 = vsyncadd [#allocation3], 4294965248  ;;  %v46_v0 = vld [vmem:[#allocation2 + $0x78] sm:$0xff]  ;;  %v45_v1 = vld [vmem:[#allocation2 + $0x70] sm:$0xff] }
   0x6   :  { %51 = vmatpush.msra.mxu0 %v46_v0  ;;  %v44_v2 = vld [vmem:[#allocation2 + $0x68] sm:$0xff]  ;;  %v43_v3 = vld [vmem:[#allocation2 + $0x60] sm:$0xff]  ;;  %v42_v4 = vld [vmem:[#allocation2 + $0x58] sm:$0xff] }
   0x7   :  { %v41_v5 = vld [vmem:[#allocation2 + $0x50] sm:$0xff]  ;;  %v40_v6 = vld [vmem:[#allocation2 + $0x48] sm:$0xff]  ;;  %v39_v7 = vld [vmem:[#allocation2 + $0x40] sm:$0xff] }
   0x8   :  { %52 = vmatpush.msra.mxu0 %v45_v1  ;;  %v38_v8 = vld [vmem:[#allocation2 + $0x38] sm:$0xff]  ;;  %v37_v9 = vld [vmem:[#allocation2 + $0x30] sm:$0xff]  ;;  %v36_v10 = vld [vmem:[#allocation2 + $0x28] sm:$0xff] }
   0x9   :  { %v35_v11 = vld [vmem:[#allocation2 + $0x20] sm:$0xff]  ;;  %v34_v12 = vld [vmem:[#allocation2 + $0x18] sm:$0xff]  ;;  %v33_v13 = vld [vmem:[#allocation2 + $0x10] sm:$0xff] }
   0xa   :  { %53 = vmatpush.msra.mxu0 %v44_v2  ;;  %v32_v14 = vld [vmem:[#allocation2 + $0x8] sm:$0xff]  ;;  %v31_v15 = vld [vmem:[#allocation2] sm:$0xff] }
   0xb   :  { %v30_v16 = vld [vmem:[%s143_s0] sm:$0xff] }
   0xc   :  { %54 = vmatpush.msra.mxu0 %v43_v3  ;;  %v81_v17 = vld [vmem:[%s145_s2] ss:$0 sm:$0xff] }
   0xe   :  { %55 = vmatpush.msra.mxu0 %v42_v4 }
  0x10   :  { %56 = vmatpush.msra.mxu0 %v41_v5 }
  0x12   :  { %57 = vmatpush.msra.mxu0 %v40_v6 }
  0x14   :  { %58 = vmatpush.msra.mxu0 %v39_v7 }
  0x16   :  { %59 = vmatpush.msra.mxu0 %v38_v8 }
  0x18   :  { %60 = vmatpush.msra.mxu0 %v37_v9 }
  0x1a   :  { %61 = vmatpush.msra.mxu0 %v36_v10 }
  0x1c   :  { %62 = vmatpush.msra.mxu0 %v35_v11 }
  0x1e   :  { %63 = vmatpush.msra.mxu0 %v34_v12 }
  0x20   :  { %64 = vmatpush.msra.mxu0 %v33_v13 }
  0x22   :  { %65 = vmatpush.msra.mxu0 %v32_v14 }
  0x24   :  { %66 = vmatpush.msra.mxu0 %v31_v15 }
  0x25   :  { %67 = vmatmul.f32.vlgmr.msra.gmra.mxu0 %v30_v16 }
  0xa2   :  { %v68_v18 = vpop.f32.mrf.mxu0 }
  0xa3   :  { %v69_v19 = vadd.f32 %v81_v17, %v68_v18 }
  0xa5   :  { %v71_v20 = vmax.f32 %v69_v19, 0.0 }
  0xa7   :  { %72 = vst [vmem:[%s146_s3] sm:$0xff] %v71_v20 }
  0xa8   :  { %77 = vsyncpa [#allocation3], 1 }

</bundles_post_ra>
